<compile_context>
chip_gen: v6e
topology: v6e:2x2x1
jax: 0.10.0
libtpu: 0.0.40
codegen_flags: <defaults>
</compile_context>

<pallas_src>
import functools

import jax
import jax.numpy as jnp
from jax.experimental import pallas as pl
from jax.experimental.pallas import tpu as pltpu


def _additive_attention_kernel(s_ref, h_ref, ws_ref, wh_ref, v_ref,
                               o_ref, m_ref, l_ref, *, n_valid, ragged):
    i = pl.program_id(0)
    tn = s_ref.shape[0]                      # rows in this N tile (static)

    @pl.when(i == 0)
    def _():
        m_ref[...] = jnp.full_like(m_ref, -jnp.inf)
        l_ref[...] = jnp.zeros_like(l_ref)

    # X.T block = tanh(Ws @ s_tile.T + Wh @ h_tile.T) -> (2*d_attn, tn).
    # dot_general contracts the feature dim of both operands, so s/h tiles are
    # consumed in their natural (tn, d) layout and N stays on the lane axis.
    dn = (((1,), (1,)), ((), ()))
    xt = jnp.tanh(
        jax.lax.dot_general(ws_ref[...], s_ref[...], dn,
                            preferred_element_type=jnp.float32)
        + jax.lax.dot_general(wh_ref[...], h_ref[...], dn,
                              preferred_element_type=jnp.float32))

    # Pre-attention scores for this column block: v @ X.T -> (1, tn).
    scores = jnp.dot(v_ref[...], xt, preferred_element_type=jnp.float32)

    if ragged:
        # Columns >= N (garbage rows from the boundary input block / output
        # padding) must not grab probability mass.
        col = i * tn + jax.lax.broadcasted_iota(jnp.int32, scores.shape, 1)
        scores = jnp.where(col < n_valid, scores, jnp.float32(-1e30))

    # Online softmax statistics (running max m, running sum-of-exp l).
    tile_max = jnp.max(scores, axis=-1, keepdims=True)          # (1, 1)
    m_old = m_ref[...]
    m_new = jnp.maximum(m_old, tile_max)
    l_ref[...] = (l_ref[...] * jnp.exp(m_old - m_new)
                  + jnp.sum(jnp.exp(scores - m_new), axis=-1, keepdims=True))
    m_ref[...] = m_new

    # Stash raw scores into the resident (1, N_pad) output row.
    if tn == o_ref.shape[1]:                 # single block: static full store
        o_ref[...] = scores
    else:                                    # tn % 128 == 0: lane-aligned slice
        start = pl.multiple_of(i * tn, tn)
        o_ref[:, pl.ds(start, tn)] = scores

    # Finalize: a single exp + multiply pass over the resident row.
    @pl.when(i == pl.num_programs(0) - 1)
    def _():
        inv_l = 1.0 / l_ref[...]             # exact divide on a (1,1): free
        o_ref[...] = jnp.exp(o_ref[...] - m_ref[...]) * inv_l


def _round_up(x: int, m: int) -> int:
    return (x + m - 1) // m * m


def _choose_tiling(n: int, d: int):
    """Pick the N-tile (rows per grid step) and the padded output width."""
    # Cap each (tn, d) f32 input buffer at ~2 MiB; tiles are lane multiples.
    cap = min(4096, max(128, (2 * 1024 * 1024) // (4 * d)))
    cap = (cap // 128) * 128
    if n <= cap:
        tn = _round_up(n, 8)                 # one block covers everything
    else:
        tn = cap
    n_pad = _round_up(n, tn)
    return tn, n_pad


def _vmem_limit_bytes(tn: int, n_pad: int, d: int, two_d_attn: int) -> int:
    lane = lambda x: _round_up(x, 128)
    sub = lambda x: _round_up(x, 8)
    out_row = sub(1) * lane(n_pad) * 4                        # resident row
    acts = 2 * 2 * sub(tn) * lane(d) * 4                      # s,h double-buffered
    wts = 2 * 2 * sub(two_d_attn) * lane(d) * 4 + 2 * sub(1) * lane(two_d_attn) * 4
    scratch = 2 * 8 * 128 * 4                                 # m, l
    need = out_row + acts + wts + scratch
    # Generous headroom, but never above v7x's 64 MiB physical VMEM.
    return int(min(64 * 1024 * 1024, max(32 * 1024 * 1024, 2 * need)))


@jax.jit
def additive_attention(s, h, W, v):
    """s, h: (N, d); W: (2*d_attn, 2*d) torch Linear layout; v: (1, 2*d_attn).

    Returns the attention weights, shape (1, N).
    """
    N, d = s.shape
    two_d_attn = W.shape[0]

    # Split the concat weight: cat([s, h], 1) @ W.T == s @ Ws.T + h @ Wh.T.
    # (If the producing model already emits bf16 activations, drop these casts
    #  and stream bf16 straight into the MXU; keep f32 accum / tanh / softmax.)
    ws = W[:, :d].astype(jnp.float32)        # (2*d_attn, d)  acts on s
    wh = W[:, d:].astype(jnp.float32)        # (2*d_attn, d)  acts on h
    s32 = s.astype(jnp.float32)              # natural (N, d) layout, no transpose
    h32 = h.astype(jnp.float32)
    v2 = v.reshape(1, two_d_attn).astype(jnp.float32)

    tn, n_pad = _choose_tiling(N, d)
    grid = (n_pad // tn,)
    ragged = n_pad != N

    kernel = functools.partial(_additive_attention_kernel,
                               n_valid=N, ragged=ragged)

    cost = pl.CostEstimate(
        flops=4 * N * d * two_d_attn + 2 * N * two_d_attn + 6 * N,
        transcendentals=N * two_d_attn + 2 * N,                # tanh + exp
        bytes_accessed=4 * (2 * N * d + 2 * two_d_attn * d
                            + two_d_attn + 3 * n_pad),
    )

    out = pl.pallas_call(
        kernel,
        out_shape=jax.ShapeDtypeStruct((1, n_pad), jnp.float32),
        grid=grid,
        in_specs=[
            pl.BlockSpec((tn, d), lambda i: (i, 0)),            # s row tile
            pl.BlockSpec((tn, d), lambda i: (i, 0)),            # h row tile
            pl.BlockSpec((two_d_attn, d), lambda i: (0, 0)),    # Ws (resident)
            pl.BlockSpec((two_d_attn, d), lambda i: (0, 0)),    # Wh (resident)
            pl.BlockSpec((1, two_d_attn), lambda i: (0, 0)),    # v  (resident)
        ],
        out_specs=pl.BlockSpec((1, n_pad), lambda i: (0, 0)),   # resident row
        scratch_shapes=[
            pltpu.VMEM((1, 1), jnp.float32),                    # running max m
            pltpu.VMEM((1, 1), jnp.float32),                    # running sum l
        ],
        compiler_params=pltpu.CompilerParams(
            dimension_semantics=("arbitrary",),
            vmem_limit_bytes=_vmem_limit_bytes(tn, n_pad, d, two_d_attn)),
        cost_estimate=cost,
    )(s32, h32, ws, wh, v2)

    return out[:, :N]


def additive_attention_ref(s, h, W, v):
    """Pure-JAX mirror of the PyTorch forward (mask=None), full f32 precision."""
    hp = jax.lax.Precision.HIGHEST
    X = jnp.tanh(jnp.dot(jnp.concatenate([s, h], axis=1), W.T, precision=hp))
    pre_attn = jnp.dot(X, v.T, precision=hp).T                  # (1, N)
    return jax.nn.softmax(pre_attn, axis=1)


def _run_case(key, N, d, d_attn):
    k_s, k_h, k_w, k_v = jax.random.split(key, 4)
    s = jax.random.normal(k_s, (N, d), dtype=jnp.float32)
    h = jax.random.normal(k_h, (N, d), dtype=jnp.float32)
    bw = 1.0 / jnp.sqrt(jnp.float32(2 * d))
    W = jax.random.uniform(k_w, (2 * d_attn, 2 * d), jnp.float32, -bw, bw)
    bv = 1.0 / jnp.sqrt(jnp.float32(2 * d_attn))
    v = jax.random.uniform(k_v, (1, 2 * d_attn), jnp.float32, -bv, bv)

    out = jax.block_until_ready(additive_attention(s, h, W, v))
    ref = additive_attention_ref(s, h, W, v)

    assert out.shape == (1, N)
    assert jnp.allclose(out, ref, atol=1e-5, rtol=1e-4)
    assert jnp.allclose(jnp.sum(out), 1.0, atol=1e-5)


if __name__ == "__main__":
    key = jax.random.PRNGKey(0)
    k0, k1 = jax.random.split(key)

    # Primary small case matching the module's intended use (seq=8, hidden=32).
    _run_case(k0, N=8, d=32, d_attn=16)
    # Ragged / multi-tile case: exercises boundary blocks, online-softmax stats
    # across grid steps, lane-aligned slice stores, and padded-column masking.
    _run_case(k1, N=5000, d=32, d_attn=16)

    print("KERNEL_OK")
</pallas_src>

<mosaic_0001>
module attributes {stable_mosaic.version = 11 : i64} {
  func.func @_additive_attention_kernel(%arg0: i32, %arg1: memref<8x32xf32, #tpu.memory_space<vmem>>, %arg2: memref<8x32xf32, #tpu.memory_space<vmem>>, %arg3: memref<32x32xf32, #tpu.memory_space<vmem>>, %arg4: memref<32x32xf32, #tpu.memory_space<vmem>>, %arg5: memref<1x32xf32, #tpu.memory_space<vmem>>, %arg6: memref<1x8xf32, #tpu.memory_space<vmem>>, %arg7: memref<1x1xf32, #tpu.memory_space<vmem>>, %arg8: memref<1x1xf32, #tpu.memory_space<vmem>>) attributes {dimension_semantics = [#tpu.dimension_semantics<arbitrary>], iteration_bounds = array<i64: 1>, scalar_prefetch = 0 : i64, scratch_operands = 2 : i64, tpu.core_type = #tpu.core_type<tc>, window_params = [{transform_indices = @transform_0, window_bounds = array<i64: 8, 32>}, {transform_indices = @transform_1, window_bounds = array<i64: 8, 32>}, {pipeline_mode = #tpu.pipeline_mode<synchronous>, transform_indices = @transform_2, window_bounds = array<i64: 32, 32>}, {pipeline_mode = #tpu.pipeline_mode<synchronous>, transform_indices = @transform_3, window_bounds = array<i64: 32, 32>}, {pipeline_mode = #tpu.pipeline_mode<synchronous>, transform_indices = @transform_4, window_bounds = array<i64: 1, 32>}, {pipeline_mode = #tpu.pipeline_mode<synchronous>, transform_indices = @transform_5, window_bounds = array<i64: 1, 8>}]} {
    %c0_i32 = arith.constant 0 : i32
    %0 = arith.cmpi eq, %arg0, %c0_i32 : i32
    %1 = arith.extui %0 : i1 to i32
    %c0_i32_0 = arith.constant 0 : i32
    %2 = arith.cmpi ne, %1, %c0_i32_0 : i32
    scf.if %2 {
      %cst_26 = arith.constant 0xFF800000 : f32
      %33 = vector.broadcast %cst_26 : f32 to vector<1x1xf32>
      %c0_27 = arith.constant 0 : index
      %c0_28 = arith.constant 0 : index
      %34 = vector.load %arg7[%c0_27, %c0_28] : memref<1x1xf32, #tpu.memory_space<vmem>>, vector<1x1xf32>
      tpu.vector_store %arg7[%c0_27, %c0_28], %33 {strides = array<i32>} : memref<1x1xf32, #tpu.memory_space<vmem>>, vector<1x1xf32>,
      %cst_29 = arith.constant 0.000000e+00 : f32
      %35 = vector.broadcast %cst_29 : f32 to vector<1x1xf32>
      %c0_30 = arith.constant 0 : index
      %c0_31 = arith.constant 0 : index
      %36 = vector.load %arg8[%c0_30, %c0_31] : memref<1x1xf32, #tpu.memory_space<vmem>>, vector<1x1xf32>
      tpu.vector_store %arg8[%c0_30, %c0_31], %35 {strides = array<i32>} : memref<1x1xf32, #tpu.memory_space<vmem>>, vector<1x1xf32>,
    } else {
    }
    %c0 = arith.constant 0 : index
    %c0_1 = arith.constant 0 : index
    %3 = vector.load %arg3[%c0, %c0_1] : memref<32x32xf32, #tpu.memory_space<vmem>>, vector<32x32xf32>
    %c0_2 = arith.constant 0 : index
    %c0_3 = arith.constant 0 : index
    %4 = vector.load %arg1[%c0_2, %c0_3] : memref<8x32xf32, #tpu.memory_space<vmem>>, vector<8x32xf32>
    %cst = arith.constant dense<0.000000e+00> : vector<32x8xf32>
    %5 = tpu.matmul %3, %4, %cst {dimension_numbers = #tpu.dot_dimension_numbers<[1], [1], [0], [0], [0, 0, 1, 0], [], []>} : vector<32x32xf32>, vector<8x32xf32>, vector<32x8xf32> -> vector<32x8xf32>
    %c0_4 = arith.constant 0 : index
    %c0_5 = arith.constant 0 : index
    %6 = vector.load %arg4[%c0_4, %c0_5] : memref<32x32xf32, #tpu.memory_space<vmem>>, vector<32x32xf32>
    %c0_6 = arith.constant 0 : index
    %c0_7 = arith.constant 0 : index
    %7 = vector.load %arg2[%c0_6, %c0_7] : memref<8x32xf32, #tpu.memory_space<vmem>>, vector<8x32xf32>
    %cst_8 = arith.constant dense<0.000000e+00> : vector<32x8xf32>
    %8 = tpu.matmul %6, %7, %cst_8 {dimension_numbers = #tpu.dot_dimension_numbers<[1], [1], [0], [0], [0, 0, 1, 0], [], []>} : vector<32x32xf32>, vector<8x32xf32>, vector<32x8xf32> -> vector<32x8xf32>
    %9 = arith.addf %5, %8 : vector<32x8xf32>
    %10 = math.tanh %9 : vector<32x8xf32>
    %c0_9 = arith.constant 0 : index
    %c0_10 = arith.constant 0 : index
    %11 = vector.load %arg5[%c0_9, %c0_10] : memref<1x32xf32, #tpu.memory_space<vmem>>, vector<1x32xf32>
    %cst_11 = arith.constant dense<0.000000e+00> : vector<1x8xf32>
    %12 = tpu.matmul %11, %10, %cst_11 {dimension_numbers = #tpu.dot_dimension_numbers<[1], [0], [0], [1], [0, 0, 1, 1], [], []>} : vector<1x32xf32>, vector<32x8xf32>, vector<1x8xf32> -> vector<1x8xf32>
    %cst_12 = arith.constant dense<0xFF800000> : vector<1xf32>
    %13 = vector.multi_reduction <maximumf>, %12, %cst_12 [1] : vector<1x8xf32> to vector<1xf32>
    %14 = vector.shape_cast %13 : vector<1xf32> to vector<1x1xf32>
    %c0_13 = arith.constant 0 : index
    %c0_14 = arith.constant 0 : index
    %15 = vector.load %arg7[%c0_13, %c0_14] : memref<1x1xf32, #tpu.memory_space<vmem>>, vector<1x1xf32>
    %16 = arith.maximumf %15, %14 : vector<1x1xf32>
    %c0_15 = arith.constant 0 : index
    %c0_16 = arith.constant 0 : index
    %17 = vector.load %arg8[%c0_15, %c0_16] : memref<1x1xf32, #tpu.memory_space<vmem>>, vector<1x1xf32>
    %18 = arith.subf %15, %16 : vector<1x1xf32>
    %19 = math.exp %18 : vector<1x1xf32>
    %20 = arith.mulf %17, %19 : vector<1x1xf32>
    %21 = vector.broadcast %16 : vector<1x1xf32> to vector<1x8xf32>
    %22 = arith.subf %12, %21 : vector<1x8xf32>
    %23 = math.exp %22 : vector<1x8xf32>
    %cst_17 = arith.constant dense<0.000000e+00> : vector<1xf32>
    %24 = vector.multi_reduction <add>, %23, %cst_17 [1] : vector<1x8xf32> to vector<1xf32>
    %25 = vector.shape_cast %24 : vector<1xf32> to vector<1x1xf32>
    %26 = arith.addf %20, %25 : vector<1x1xf32>
    %c0_18 = arith.constant 0 : index
    %c0_19 = arith.constant 0 : index
    %27 = vector.load %arg8[%c0_18, %c0_19] : memref<1x1xf32, #tpu.memory_space<vmem>>, vector<1x1xf32>
    tpu.vector_store %arg8[%c0_18, %c0_19], %26 {strides = array<i32>} : memref<1x1xf32, #tpu.memory_space<vmem>>, vector<1x1xf32>,
    %c0_20 = arith.constant 0 : index
    %c0_21 = arith.constant 0 : index
    %28 = vector.load %arg7[%c0_20, %c0_21] : memref<1x1xf32, #tpu.memory_space<vmem>>, vector<1x1xf32>
    tpu.vector_store %arg7[%c0_20, %c0_21], %16 {strides = array<i32>} : memref<1x1xf32, #tpu.memory_space<vmem>>, vector<1x1xf32>,
    %c0_22 = arith.constant 0 : index
    %c0_23 = arith.constant 0 : index
    %29 = vector.load %arg6[%c0_22, %c0_23] : memref<1x8xf32, #tpu.memory_space<vmem>>, vector<1x8xf32>
    tpu.vector_store %arg6[%c0_22, %c0_23], %12 {strides = array<i32>} : memref<1x8xf32, #tpu.memory_space<vmem>>, vector<1x8xf32>,
    %c0_i32_24 = arith.constant 0 : i32
    %30 = arith.cmpi eq, %arg0, %c0_i32_24 : i32
    %31 = arith.extui %30 : i1 to i32
    %c0_i32_25 = arith.constant 0 : i32
    %32 = arith.cmpi ne, %31, %c0_i32_25 : i32
    scf.if %32 {
      %c0_26 = arith.constant 0 : index
      %c0_27 = arith.constant 0 : index
      %33 = vector.load %arg8[%c0_26, %c0_27] : memref<1x1xf32, #tpu.memory_space<vmem>>, vector<1x1xf32>
      %cst_28 = arith.constant 1.000000e+00 : f32
      %34 = vector.broadcast %cst_28 : f32 to vector<1x1xf32>
      %35 = arith.divf %34, %33 : vector<1x1xf32>
      %c0_29 = arith.constant 0 : index
      %c0_30 = arith.constant 0 : index
      %36 = vector.load %arg6[%c0_29, %c0_30] : memref<1x8xf32, #tpu.memory_space<vmem>>, vector<1x8xf32>
      %c0_31 = arith.constant 0 : index
      %c0_32 = arith.constant 0 : index
      %37 = vector.load %arg7[%c0_31, %c0_32] : memref<1x1xf32, #tpu.memory_space<vmem>>, vector<1x1xf32>
      %38 = vector.broadcast %37 : vector<1x1xf32> to vector<1x8xf32>
      %39 = arith.subf %36, %38 : vector<1x8xf32>
      %40 = math.exp %39 : vector<1x8xf32>
      %41 = vector.broadcast %35 : vector<1x1xf32> to vector<1x8xf32>
      %42 = arith.mulf %40, %41 : vector<1x8xf32>
      %c0_33 = arith.constant 0 : index
      %c0_34 = arith.constant 0 : index
      %43 = vector.load %arg6[%c0_33, %c0_34] : memref<1x8xf32, #tpu.memory_space<vmem>>, vector<1x8xf32>
      tpu.vector_store %arg6[%c0_33, %c0_34], %42 {strides = array<i32>} : memref<1x8xf32, #tpu.memory_space<vmem>>, vector<1x8xf32>,
    } else {
    }
    return
  }
  func.func @transform_0(%arg0: i32) -> (i32, i32) {
    %c0_i32 = arith.constant 0 : i32
    %c0_i32_0 = arith.constant 0 : i32
    return %arg0, %c0_i32 : i32, i32
  }
  func.func @transform_1(%arg0: i32) -> (i32, i32) {
    %c0_i32 = arith.constant 0 : i32
    %c0_i32_0 = arith.constant 0 : i32
    return %arg0, %c0_i32 : i32, i32
  }
  func.func @transform_2(%arg0: i32) -> (i32, i32) {
    %c0_i32 = arith.constant 0 : i32
    %c0_i32_0 = arith.constant 0 : i32
    %c0_i32_1 = arith.constant 0 : i32
    return %c0_i32, %c0_i32_0 : i32, i32
  }
  func.func @transform_3(%arg0: i32) -> (i32, i32) {
    %c0_i32 = arith.constant 0 : i32
    %c0_i32_0 = arith.constant 0 : i32
    %c0_i32_1 = arith.constant 0 : i32
    return %c0_i32, %c0_i32_0 : i32, i32
  }
  func.func @transform_4(%arg0: i32) -> (i32, i32) {
    %c0_i32 = arith.constant 0 : i32
    %c0_i32_0 = arith.constant 0 : i32
    %c0_i32_1 = arith.constant 0 : i32
    return %c0_i32, %c0_i32_0 : i32, i32
  }
  func.func @transform_5(%arg0: i32) -> (i32, i32) {
    %c0_i32 = arith.constant 0 : i32
    %c0_i32_0 = arith.constant 0 : i32
    %c0_i32_1 = arith.constant 0 : i32
    return %c0_i32, %c0_i32_0 : i32, i32
  }
}

</mosaic_0001>

<bundles_post_ra>
// kernel: additive_attention.1
= control target key start
LH: loop header
LB: loop body
LE: loop exit
PB: predicated region body
PF: predicated region fallthrough
CT: control target
= control target key end

     0   :  { %vm38_vm0 = vcmask 261120   ;;  %s583_s0 = inlined_call_operand.vmem [shape: f32[8,32], index: 0, kind: input, shape index: {}]   ;;  %s584_s1 = inlined_call_operand.vmem [shape: f32[8,32], index: 1, kind: input, shape index: {}]   ;;  %s585_s2 = inlined_call_operand.vmem [shape: f32[32,32], index: 2, kind: input, shape index: {}]   ;;  %s586_s3 = inlined_call_operand.vmem [shape: f32[32,32], index: 3, kind: input, shape index: {}]   ;;  %s587_s4 = inlined_call_operand.vmem [shape: f32[1,32], index: 4, kind: input, shape index: {}]   ;;  %s588_s5 = inlined_call_operand.hbm [shape: f32[1,8], index: 5, kind: output, shape index: {}]  }
   0x1   :  { %v37_v0 = vld [vmem:[%s584_s1] sm:$0xff]  ;;  %v34_v4 = vld [vmem:[%s586_s3 + $0x8] sm:$0xff]  ;;  %v35_v6 = vld [vmem:[%s586_s3 + $0x10] sm:$0xff] }
   0x2   :  { %v32_v1 = vld [vmem:[%s583_s0] sm:$0xff]  ;;  %419 = vmatprep.subr.msk.mxu0 %vm38_vm0, %v37_v0  ;;  %v29_v5 = vld [vmem:[%s585_s2 + $0x8] sm:$0xff]  ;;  %v30_v7 = vld [vmem:[%s585_s2 + $0x10] sm:$0xff] }
   0x3   :  { %v33_v2 = vld [vmem:[%s586_s3] sm:$0xff]  ;;  %427 = vmatprep.subr.msk.mxu1 %vm38_vm0, %v32_v1  ;;  %420 = vmatpush3.xpose.msk.msra.mxu0 %vm38_vm0, %v37_v0 }
   0x4   :  { %v28_v3 = vld [vmem:[%s585_s2] sm:$0xff]  ;;  %428 = vmatpush3.xpose.msk.msra.mxu1 %vm38_vm0, %v32_v1  ;;  %421 = vmatprep.mubr.msk.f32.mxu0 %vm38_vm0, %v33_v2 }
   0x5   :  { %429 = vmatprep.mubr.msk.f32.mxu1 %vm38_vm0, %v28_v3 }
   0x6   :  { %10 = vsyncpa [#allocation5], 0  ;;  %422 = vmatmul.mubr.msk.f32.vlgmr.msra.gmra.mxu0 %vm38_vm0, %v34_v4  ;;  %v36_v8 = vld [vmem:[%s586_s3 + $0x18] sm:$0xff]  ;;  %v491_v10 = vmov 0.0   ;;  %vm492_vm1 = vmmov 0   ;;  %vm317_vm2 = vcmask 57344   ;;  %v333_v37 = vlaneseq }
   0x7   :  { %430 = vmatmul.mubr.msk.f32.vlgmr.msra.gmra.mxu1 %vm38_vm0, %v29_v5  ;;  %424 = vmatprep.mubr.msk.f32.mxu0 %vm38_vm0, %v35_v6  ;;  %v31_v9 = vld [vmem:[%s585_s2 + $0x18] sm:$0xff]  ;;  %v243_v26 = vld [vmem:[%s587_s4] sm:$0x1]  ;;  %vm25_vm3 = vcmask 0   ;;  %v493_v31 = vmov -inf   ;;  %v494_v32 = vmov 0  }
   0x8   :  { %432 = vmatprep.mubr.msk.f32.mxu1 %vm38_vm0, %v30_v7  ;;  %435 = vmatprep.subr.mxu0 %v491_v10  ;;  %26 = vst.msk [vmem:[#allocation2] sm:$0x1] %vm25_vm3, %v493_v31  ;;  %27 = vst.msk [vmem:[#allocation3] sm:$0x1] %vm25_vm3, %v491_v10  ;;  %v334_v38 = vshrl.u32 %v333_v37, 7  ;;  %s495_s4 = smov [#allocation4]  }
   0x9   :  { %451 = vset.pattern.permute.xlu0 %v494_v32  ;;  %452 = vset.pattern.permute.xlu1 %v494_v32  ;;  %s385_s11 = sshll.u32 %s495_s4, 4  ;;  %s386_s11 = int_to_ptr.vmem [resolvable:$true] %s385_s11 }
   0xa   :  { %425 = vmatmul.mubr.msk.f32.gmra.mxu0 %vm38_vm0, %v36_v8  ;;  %v335_v39 = vsub.s32 0, %v334_v38  ;;  %s469_s12 = scalar_lea.vmem %s386_s11, 16  ;;  %s473_s13 = scalar_lea.vmem %s386_s11, 32 }
   0xb   :  { %433 = vmatmul.mubr.msk.f32.gmra.mxu1 %vm38_vm0, %v31_v9  ;;  %443 = vmatprep.mubr.msk.f32.mxu0 %vm492_vm1, %v491_v10  ;;  %p470_p0 = scmp.ne.s32.totalorder %s386_s11, %s469_s12  ;;  %p474_p1 = scmp.lt.s32.totalorder %s386_s11, %s386_s11 }
   0xc   :  { %p475_p2 = scmp.lt.s32.totalorder %s473_s13, %s469_s12 }
   0xe   :  { %p476_p3 = por %p475_p2, %p474_p1 }
   0xf   :  { %v321_v33 = vld [vmem:[#allocation2] sm:$0x1]  ;;  %v323_v49 = vld [vmem:[#allocation3] sm:$0x1] }
  0x10   :  { %p477_p4 = pnand %p476_p3, %p470_p0 }
  0xc6   :  { %v423_v11 = vpop.f32.mrf.mxu0 }
  0xc7   :  { %v431_v12 = vpop.f32.mrf.mxu1 }
  0xc8   :  { %v120_v13 = vpop.f32.mrf.mxu0  ;;  %v226_v20 = vadd.f32 %v431_v12, %v423_v11 }
  0xc9   :  { %v220_v14 = vpop.f32.mrf.mxu1 }
  0xca   :  { %v426_v15 = vpop.f32.mrf.mxu0  ;;  %v221_v22 = vadd.f32 %v220_v14, %v120_v13 }
  0xcb   :  { %v434_v16 = vpop.f32.mrf.mxu1 }
  0xcc   :  { %v236_v17 = vadd.f32 %v434_v16, %v426_v15  ;;  %v130_v18 = vpop.f32.mrf.mxu0 }
  0xcd   :  { %v230_v19 = vpop.f32.mrf.mxu1 }
  0xce   :  { %453 = vtanh.f32 %v236_v17  ;;  %v231_v21 = vadd.f32 %v230_v19, %v130_v18 }
  0xd0   :  { %455 = vtanh.f32 %v231_v21 }
  0xd1   :  { %457 = vtanh.f32 %v226_v20 }
  0xd2   :  { %459 = vtanh.f32 %v221_v22 }
  0xdb   :  { %v454_v23 = vpop.eup %453 }
  0xdc   :  { %436 = vmatpush3.msra.mxu0 %v454_v23 }
  0xdd   :  { %v456_v24 = vpop.eup %455  ;;  %437 = vmatprep.subr.mxu0 %v491_v10 }
  0xde   :  { %438 = vmatpush3.msra.mxu0 %v456_v24  ;;  %v458_v25 = vpop.eup %457 }
  0xdf   :  { %439 = vmatprep.subr.mxu0 %v491_v10  ;;  %v460_v27 = vpop.eup %459 }
  0xe0   :  { %440 = vmatpush3.msra.mxu0 %v458_v25 }
  0xe1   :  { %441 = vmatprep.subr.mxu0 %v491_v10 }
  0xe2   :  { %442 = vmatpush3.msra.mxu0 %v460_v27 }
  0xe3   :  { %444 = vmatmul.mubr.msk.f32.vlgmr.msra.gmra.mxu0 %vm38_vm0, %v243_v26 }
 0x1a3   :  { %v313_v28 = vpop.f32.mrf.mxu0 }
 0x1a4   :  { %347 = vst.msk [vmem:[#allocation4] sm:$0x1] %vm317_vm2, %v313_v28  ;;  %v318_v29 = vsel %vm317_vm2, %v313_v28, -inf }
 0x1a5   :  { %319 = vmax.xlane.f32.xlu0 %v318_v29  ;;  %v445_v30 = vpop.f32.mrf.mxu0 }
 0x1ab   :  { %v354_v57 = vld [vmem:[#allocation4] sm:$0x1] }
 0x22e   :  { %v320_v34 = vpop.xlane.xlu0 %319 }
 0x22f   :  { %v322_v35 = vmax.f32 %v321_v33, %v320_v34 }
 0x231   :  { %v324_v36 = vsub.f32 %v321_v33, %v322_v35  ;;  %346 = vst.msk [vmem:[#allocation2] sm:$0x1] %vm25_vm3, %v322_v35  ;;  %330 = vperm.xlu0 %451, %v322_v35  }
 0x233   :  { %v325_v47 = vmul.f32 1.442695, %v324_v36 }
 0x238   :  { %v355_v46 = vld [vmem:[#allocation2] sm:$0x1] }
 0x2ac   :  { %v331_v40 = vpop.permute.xlu0 %330 }
 0x2ad   :  { %v336_v41 = vrot.slane %v331_v40, %v335_v39 }
 0x2af   :  { %v337_v42 = vsub.f32 %v313_v28, %v336_v41 }
 0x2b1   :  { %v338_v43 = vmul.f32 1.442695, %v337_v42 }
 0x2b3   :  { %461 = vpow2.f32 %v338_v43 }
 0x2b4   :  { %463 = vpow2.f32 %v325_v47 }
 0x2c0   :  { %v462_v44 = vpop.eup %461 }
 0x2c1   :  { %v340_v45 = vsel %vm317_vm2, %v462_v44, 0.0  ;;  %v464_v48 = vpop.eup %463 }
 0x2c2   :  { %341 = vadd.xlane.f32.xlu1 %v340_v45  ;;  %v327_v50 = vmul.f32 %v464_v48, %v323_v49 }
 0x2d3   :  { %358 = vperm.xlu1 %452, %v355_v46  }
 0x34b   :  { %v342_v51 = vpop.xlane.xlu1 %341 }
 0x34c   :  { %v343_v52 = vadd.f32 %v342_v51, %v327_v50 }
 0x34e   :  { %345 = vst.msk [vmem:[#allocation3] sm:$0x1] %vm25_vm3, %v343_v52 }
 0x34f   :  { %v359_v55 = vpop.permute.xlu1 %358 }
 0x350   :  { %v364_v56 = vrot.slane %v359_v55, %v335_v39 }
 0x352   :  { %v365_v58 = vsub.f32 %v354_v57, %v364_v56 }
 0x354   :  { %v366_v59 = vmul.f32 1.442695, %v365_v58 }
 0x355   :  { %v351_v53 = vld [vmem:[#allocation3] sm:$0x1] }
 0x356   :  { %465 = vrcp.f32 %v351_v53 }
 0x357   :  { %467 = vpow2.f32 %v366_v59 }
 0x363   :  { %v466_v54 = vpop.eup %465 }
 0x364   :  { %370 = vperm.xlu1 %452, %v466_v54   ;;  %v468_v62 = vpop.eup %467 }
 0x3df   :  { %v371_v60 = vpop.permute.xlu1 %370 }
 0x3e0   :  { %v376_v61 = vrot.slane %v371_v60, %v335_v39 }
 0x3e2   :  { %v377_v63 = vmul.f32 %v468_v62, %v376_v61 }
 0x3e4   :  { %378 = vst.msk [vmem:[#allocation4] sm:$0x1] %vm317_vm2, %v377_v63 }
 0x3e5   :  { %480 = shalt.err (!%p477_p4)
}
 0x3e6   :  { %388 = dma.vmem_to_hbm [thread:$0]  %s386_s11, 16, %s588_s5, [#allocation5]  }
 0x3e7   :  { %489 = dma.done.wait [#allocation5], 16  }
 0x3e8   :  { %490 = vsyncadd [#allocation5], 4294967280 }
 0x3e9   :  { %392 = vsyncpa [#allocation5], 1 }

</bundles_post_ra>
